<compile_context>
chip_gen: v6e
topology: v6e:2x2x1
jax: 0.10.0
libtpu: 0.0.40
codegen_flags: <defaults>
</compile_context>

<pallas_src>
import functools

import numpy as np
import jax
import jax.numpy as jnp
from jax.experimental import pallas as pl
from jax.experimental.pallas import tpu as pltpu


def _gradient_kernel(x_ref, av_ref, b_ref, o_ref, *, bn, s_h, out_h, out_w, length):
    """x_ref : (bn, C*H, W)   input images, channels/rows flattened, native dtype
    av_ref: (s_h*out_h, C*H)  f32 banded 0/1 selector (channel sum + vert taps + pad)
    b_ref : (s_h, W, 2*out_w) f32 banded horizontal-tap coefficients, [K_h | K_v]
    o_ref : (bn, out_h, out_w) if length else (bn, out_h, 2*out_w)
    """
    av = av_ref[...]                                        # shared across the batch block
    for b in range(bn):                                     # small, fully unrolled
        x = x_ref[b].astype(jnp.float32)                    # (C*H, W), cast in-kernel
        # Stage 1 (MXU): channel sum + vertical taps + implicit top/bottom pad.
        s = jnp.dot(av, x, preferred_element_type=jnp.float32)      # (s_h*out_h, W)
        # Stage 2 (MXU): horizontal taps with kernel coefficients + implicit
        # left/right pad; both gradient kernels share the contraction -> [h | v].
        acc = jnp.zeros((out_h, 2 * out_w), jnp.float32)
        for a in range(s_h):
            acc = acc + jnp.dot(s[a * out_h:(a + 1) * out_h, :], b_ref[a],
                                preferred_element_type=jnp.float32)
        if length:
            h = acc[:, :out_w]
            v = acc[:, out_w:]
            o_ref[b] = jnp.sqrt(h * h + v * v)              # fused gradient magnitude
        else:
            o_ref[b] = acc


def _build_banded_operands(kh, kv, C, H, W):
    """Host-side (numpy) construction of the small banded matmul operands."""
    s_h, s_w = kh.shape
    # Padding exactly as ConvolutionKernel builds it for F.pad (left,right,top,bottom):
    pad_left = s_h // 2 - 1 + s_h % 2
    pad_right = s_h // 2
    pad_top = s_w // 2 - 1 + s_w % 2
    pad_bottom = s_w // 2
    out_h = H + pad_top + pad_bottom - s_h + 1
    out_w = W + pad_left + pad_right - s_w + 1

    # Av[a*out_h + i, c*H + r] = 1  iff  r == i + a - pad_top   (for every channel c)
    av = np.zeros((s_h * out_h, C * H), np.float32)
    for a in range(s_h):
        for i in range(out_h):
            r = i + a - pad_top
            if 0 <= r < H:
                av[a * out_h + i, r::H] = 1.0

    # Bcat[a, w, j]         = K_h[a, b]  iff  w == j + b - pad_left
    # Bcat[a, w, out_w + j] = K_v[a, b]  iff  w == j + b - pad_left
    bcat = np.zeros((s_h, W, 2 * out_w), np.float32)
    for a in range(s_h):
        for b in range(s_w):
            for j in range(out_w):
                w = j + b - pad_left
                if 0 <= w < W:
                    bcat[a, w, j] = kh[a, b]
                    bcat[a, w, out_w + j] = kv[a, b]
    return av, bcat, out_h, out_w


def gradient_kernel_forward(img, kernel_h, kernel_v, length=False, normalize=False,
                            max_batch_block=8):
    """JAX/Pallas equivalent of GradientKernel(kernel_h, kernel_v, length, normalize)(img)."""
    img = jnp.asarray(img)
    if img.ndim == 2:
        img = img[None]
    if img.ndim == 3:
        img = img[None]
    N, C, H, W = map(int, img.shape)

    kh = np.asarray(kernel_h, np.float32)
    kv = np.asarray(kernel_v, np.float32)
    if kh.ndim != 2 or kv.ndim != 2 or kh.shape != kv.shape:
        raise ValueError("kernel_h / kernel_v must be 2D kernels of equal shape")
    s_h = int(kh.shape[0])

    av, bcat, out_h, out_w = _build_banded_operands(kh, kv, C, H, W)

    # Free (metadata-only) reshape; NO host-side pad or dtype cast of the image.
    xflat = img.reshape(N, C * H, W)

    # Largest divisor of N (capped) -> several images per grid step; batch axis
    # stays "parallel" so v7x's two TensorCores shard it when grid > 1.
    bn = 1
    for d in range(1, min(N, max_batch_block) + 1):
        if N % d == 0:
            bn = d

    out_lanes = out_w if length else 2 * out_w

    kernel = functools.partial(_gradient_kernel, bn=bn, s_h=s_h,
                               out_h=out_h, out_w=out_w, length=length)

    raw = pl.pallas_call(
        kernel,
        out_shape=jax.ShapeDtypeStruct((N, out_h, out_lanes), jnp.float32),
        grid_spec=pltpu.PrefetchScalarGridSpec(
            num_scalar_prefetch=0,
            grid=(N // bn,),
            in_specs=[
                pl.BlockSpec((bn, C * H, W), lambda i: (i, 0, 0)),
                pl.BlockSpec((s_h * out_h, C * H), lambda i: (0, 0)),
                pl.BlockSpec((s_h, W, 2 * out_w), lambda i: (0, 0, 0)),
            ],
            out_specs=pl.BlockSpec((bn, out_h, out_lanes), lambda i: (i, 0, 0)),
        ),
        compiler_params=pltpu.CompilerParams(
            dimension_semantics=("parallel",),
        ),
    )(xflat, jnp.asarray(av), jnp.asarray(bcat))

    # Glue (plain JAX, lazy broadcasts): the expanded conv2d weight makes every
    # output channel identical, so broadcast the unique per-image planes to the
    # N output channels torch's conv2d would produce; never done inside the kernel.
    if length:
        return jnp.broadcast_to(raw[:, None, :, :], (N, N, out_h, out_w))
    h = raw[:, :, :out_w]
    v = raw[:, :, out_w:]
    g = jnp.concatenate(
        [jnp.broadcast_to(h[:, None, :, :], (N, N, out_h, out_w)),
         jnp.broadcast_to(v[:, None, :, :], (N, N, out_h, out_w))],
        axis=1)                                  # == torch.cat([kh(img), kv(img)], dim=1)
    if normalize:
        # Mirrors torch's `g / torch.norm(g, dim=1)` broadcasting (well-defined for N == 1).
        g = g / jnp.linalg.norm(g, axis=1)
    return g


def _reference(img, kernel_h, kernel_v, length=False, normalize=False):
    """Pure-JAX reference mirroring ConvolutionKernel (F.pad + conv2d with the
    expanded weight) and GradientKernel's combine step."""
    img = jnp.asarray(img, jnp.float32)
    N, C, H, W = img.shape

    def conv(kernel):
        k = jnp.asarray(kernel, jnp.float32)
        s_h, s_w = k.shape
        pad_left = s_h // 2 - 1 + s_h % 2
        pad_right = s_h // 2
        pad_top = s_w // 2 - 1 + s_w % 2
        pad_bottom = s_w // 2
        padded = jnp.pad(img, ((0, 0), (0, 0), (pad_top, pad_bottom),
                               (pad_left, pad_right)))
        out_h = padded.shape[2] - s_h + 1
        out_w = padded.shape[3] - s_w + 1
        acc = jnp.zeros((N, out_h, out_w), jnp.float32)
        for a in range(s_h):
            for b in range(s_w):
                acc = acc + k[a, b] * padded[:, :, a:a + out_h, b:b + out_w].sum(axis=1)
        return jnp.broadcast_to(acc[:, None], (N, N, out_h, out_w))

    h = conv(kernel_h)
    v = conv(kernel_v)
    if length:
        return jnp.sqrt(v ** 2 + h ** 2)
    g = jnp.concatenate([h, v], axis=1)
    if normalize:
        g = g / jnp.linalg.norm(g, axis=1)
    return g


if __name__ == "__main__":
    key = jax.random.PRNGKey(0)
    # Small shapes consistent with the module: batch=2, channels=4, spatial=16x16.
    x = jax.random.normal(key, (2, 4, 16, 16), dtype=jnp.float32)
    sobel_h = jnp.array([[-1., 0., 1.],
                         [-2., 0., 2.],
                         [-1., 0., 1.]], dtype=jnp.float32)
    sobel_v = sobel_h.T

    # Default GradientKernel(kernel_h, kernel_v): length=False, normalize=False.
    out = gradient_kernel_forward(x, sobel_h, sobel_v, length=False, normalize=False)
    out = jax.block_until_ready(out)
    ref = _reference(x, sobel_h, sobel_v, length=False, normalize=False)
    assert out.shape == (2, 4, 16, 16), out.shape
    assert out.dtype == jnp.float32
    assert jnp.allclose(out, ref, atol=1e-4, rtol=1e-4), "mismatch vs reference (cat path)"

    # length=True path: gradient magnitude.
    out_len = gradient_kernel_forward(x, sobel_h, sobel_v, length=True)
    out_len = jax.block_until_ready(out_len)
    ref_len = _reference(x, sobel_h, sobel_v, length=True)
    assert out_len.shape == (2, 2, 16, 16), out_len.shape
    assert jnp.allclose(out_len, ref_len, atol=1e-4, rtol=1e-4), "mismatch vs reference (length path)"

    print("KERNEL_OK")
</pallas_src>

<mosaic_0001>
module attributes {stable_mosaic.version = 11 : i64} {
  func.func @_gradient_kernel(%arg0: i32, %arg1: memref<2x64x16xf32, #tpu.memory_space<vmem>>, %arg2: memref<48x64xf32, #tpu.memory_space<vmem>>, %arg3: memref<3x16x32xf32, #tpu.memory_space<vmem>>, %arg4: memref<2x16x32xf32, #tpu.memory_space<vmem>>) attributes {dimension_semantics = [#tpu.dimension_semantics<parallel>], iteration_bounds = array<i64: 1>, scalar_prefetch = 0 : i64, scratch_operands = 0 : i64, tpu.core_type = #tpu.core_type<tc>, window_params = [{transform_indices = @transform_0, window_bounds = array<i64: 2, 64, 16>}, {pipeline_mode = #tpu.pipeline_mode<synchronous>, transform_indices = @transform_1, window_bounds = array<i64: 48, 64>}, {pipeline_mode = #tpu.pipeline_mode<synchronous>, transform_indices = @transform_2, window_bounds = array<i64: 3, 16, 32>}, {transform_indices = @transform_3, window_bounds = array<i64: 2, 16, 32>}]} {
    %c0 = arith.constant 0 : index
    %c0_0 = arith.constant 0 : index
    %0 = vector.load %arg2[%c0, %c0_0] : memref<48x64xf32, #tpu.memory_space<vmem>>, vector<48x64xf32>
    %c0_1 = arith.constant 0 : index
    %c0_2 = arith.constant 0 : index
    %c0_3 = arith.constant 0 : index
    %1 = vector.load %arg1[%c0_1, %c0_2, %c0_3] : memref<2x64x16xf32, #tpu.memory_space<vmem>>, vector<1x64x16xf32>
    %2 = vector.shape_cast %1 : vector<1x64x16xf32> to vector<64x16xf32>
    %cst = arith.constant dense<0.000000e+00> : vector<48x16xf32>
    %3 = tpu.matmul %0, %2, %cst {dimension_numbers = #tpu.dot_dimension_numbers<[1], [0], [0], [1], [0, 0, 1, 1], [], []>} : vector<48x64xf32>, vector<64x16xf32>, vector<48x16xf32> -> vector<48x16xf32>
    %cst_4 = arith.constant 0.000000e+00 : f32
    %4 = vector.broadcast %cst_4 : f32 to vector<16x32xf32>
    %5 = vector.extract_strided_slice %3 {offsets = [0, 0], sizes = [16, 16], strides = [1, 1]} : vector<48x16xf32> to vector<16x16xf32>
    %c0_5 = arith.constant 0 : index
    %c0_6 = arith.constant 0 : index
    %c0_7 = arith.constant 0 : index
    %6 = vector.load %arg3[%c0_5, %c0_6, %c0_7] : memref<3x16x32xf32, #tpu.memory_space<vmem>>, vector<1x16x32xf32>
    %7 = vector.shape_cast %6 : vector<1x16x32xf32> to vector<16x32xf32>
    %cst_8 = arith.constant dense<0.000000e+00> : vector<16x32xf32>
    %8 = tpu.matmul %5, %7, %cst_8 {dimension_numbers = #tpu.dot_dimension_numbers<[1], [0], [0], [1], [0, 0, 1, 1], [], []>} : vector<16x16xf32>, vector<16x32xf32>, vector<16x32xf32> -> vector<16x32xf32>
    %9 = arith.addf %4, %8 : vector<16x32xf32>
    %10 = vector.extract_strided_slice %3 {offsets = [16, 0], sizes = [16, 16], strides = [1, 1]} : vector<48x16xf32> to vector<16x16xf32>
    %c1 = arith.constant 1 : index
    %c0_9 = arith.constant 0 : index
    %c0_10 = arith.constant 0 : index
    %11 = vector.load %arg3[%c1, %c0_9, %c0_10] : memref<3x16x32xf32, #tpu.memory_space<vmem>>, vector<1x16x32xf32>
    %12 = vector.shape_cast %11 : vector<1x16x32xf32> to vector<16x32xf32>
    %cst_11 = arith.constant dense<0.000000e+00> : vector<16x32xf32>
    %13 = tpu.matmul %10, %12, %cst_11 {dimension_numbers = #tpu.dot_dimension_numbers<[1], [0], [0], [1], [0, 0, 1, 1], [], []>} : vector<16x16xf32>, vector<16x32xf32>, vector<16x32xf32> -> vector<16x32xf32>
    %14 = arith.addf %9, %13 : vector<16x32xf32>
    %15 = vector.extract_strided_slice %3 {offsets = [32, 0], sizes = [16, 16], strides = [1, 1]} : vector<48x16xf32> to vector<16x16xf32>
    %c2 = arith.constant 2 : index
    %c0_12 = arith.constant 0 : index
    %c0_13 = arith.constant 0 : index
    %16 = vector.load %arg3[%c2, %c0_12, %c0_13] : memref<3x16x32xf32, #tpu.memory_space<vmem>>, vector<1x16x32xf32>
    %17 = vector.shape_cast %16 : vector<1x16x32xf32> to vector<16x32xf32>
    %cst_14 = arith.constant dense<0.000000e+00> : vector<16x32xf32>
    %18 = tpu.matmul %15, %17, %cst_14 {dimension_numbers = #tpu.dot_dimension_numbers<[1], [0], [0], [1], [0, 0, 1, 1], [], []>} : vector<16x16xf32>, vector<16x32xf32>, vector<16x32xf32> -> vector<16x32xf32>
    %19 = arith.addf %14, %18 : vector<16x32xf32>
    %c0_15 = arith.constant 0 : index
    %c0_16 = arith.constant 0 : index
    %c0_17 = arith.constant 0 : index
    %20 = vector.load %arg4[%c0_15, %c0_16, %c0_17] : memref<2x16x32xf32, #tpu.memory_space<vmem>>, vector<1x16x32xf32>
    %21 = vector.shape_cast %20 : vector<1x16x32xf32> to vector<16x32xf32>
    %22 = vector.shape_cast %19 : vector<16x32xf32> to vector<1x16x32xf32>
    tpu.vector_store %arg4[%c0_15, %c0_16, %c0_17], %22 {strides = array<i32>} : memref<2x16x32xf32, #tpu.memory_space<vmem>>, vector<1x16x32xf32>,
    %c1_18 = arith.constant 1 : index
    %c0_19 = arith.constant 0 : index
    %c0_20 = arith.constant 0 : index
    %23 = vector.load %arg1[%c1_18, %c0_19, %c0_20] : memref<2x64x16xf32, #tpu.memory_space<vmem>>, vector<1x64x16xf32>
    %24 = vector.shape_cast %23 : vector<1x64x16xf32> to vector<64x16xf32>
    %cst_21 = arith.constant dense<0.000000e+00> : vector<48x16xf32>
    %25 = tpu.matmul %0, %24, %cst_21 {dimension_numbers = #tpu.dot_dimension_numbers<[1], [0], [0], [1], [0, 0, 1, 1], [], []>} : vector<48x64xf32>, vector<64x16xf32>, vector<48x16xf32> -> vector<48x16xf32>
    %cst_22 = arith.constant 0.000000e+00 : f32
    %26 = vector.broadcast %cst_22 : f32 to vector<16x32xf32>
    %27 = vector.extract_strided_slice %25 {offsets = [0, 0], sizes = [16, 16], strides = [1, 1]} : vector<48x16xf32> to vector<16x16xf32>
    %c0_23 = arith.constant 0 : index
    %c0_24 = arith.constant 0 : index
    %c0_25 = arith.constant 0 : index
    %28 = vector.load %arg3[%c0_23, %c0_24, %c0_25] : memref<3x16x32xf32, #tpu.memory_space<vmem>>, vector<1x16x32xf32>
    %29 = vector.shape_cast %28 : vector<1x16x32xf32> to vector<16x32xf32>
    %cst_26 = arith.constant dense<0.000000e+00> : vector<16x32xf32>
    %30 = tpu.matmul %27, %29, %cst_26 {dimension_numbers = #tpu.dot_dimension_numbers<[1], [0], [0], [1], [0, 0, 1, 1], [], []>} : vector<16x16xf32>, vector<16x32xf32>, vector<16x32xf32> -> vector<16x32xf32>
    %31 = arith.addf %26, %30 : vector<16x32xf32>
    %32 = vector.extract_strided_slice %25 {offsets = [16, 0], sizes = [16, 16], strides = [1, 1]} : vector<48x16xf32> to vector<16x16xf32>
    %c1_27 = arith.constant 1 : index
    %c0_28 = arith.constant 0 : index
    %c0_29 = arith.constant 0 : index
    %33 = vector.load %arg3[%c1_27, %c0_28, %c0_29] : memref<3x16x32xf32, #tpu.memory_space<vmem>>, vector<1x16x32xf32>
    %34 = vector.shape_cast %33 : vector<1x16x32xf32> to vector<16x32xf32>
    %cst_30 = arith.constant dense<0.000000e+00> : vector<16x32xf32>
    %35 = tpu.matmul %32, %34, %cst_30 {dimension_numbers = #tpu.dot_dimension_numbers<[1], [0], [0], [1], [0, 0, 1, 1], [], []>} : vector<16x16xf32>, vector<16x32xf32>, vector<16x32xf32> -> vector<16x32xf32>
    %36 = arith.addf %31, %35 : vector<16x32xf32>
    %37 = vector.extract_strided_slice %25 {offsets = [32, 0], sizes = [16, 16], strides = [1, 1]} : vector<48x16xf32> to vector<16x16xf32>
    %c2_31 = arith.constant 2 : index
    %c0_32 = arith.constant 0 : index
    %c0_33 = arith.constant 0 : index
    %38 = vector.load %arg3[%c2_31, %c0_32, %c0_33] : memref<3x16x32xf32, #tpu.memory_space<vmem>>, vector<1x16x32xf32>
    %39 = vector.shape_cast %38 : vector<1x16x32xf32> to vector<16x32xf32>
    %cst_34 = arith.constant dense<0.000000e+00> : vector<16x32xf32>
    %40 = tpu.matmul %37, %39, %cst_34 {dimension_numbers = #tpu.dot_dimension_numbers<[1], [0], [0], [1], [0, 0, 1, 1], [], []>} : vector<16x16xf32>, vector<16x32xf32>, vector<16x32xf32> -> vector<16x32xf32>
    %41 = arith.addf %36, %40 : vector<16x32xf32>
    %c1_35 = arith.constant 1 : index
    %c0_36 = arith.constant 0 : index
    %c0_37 = arith.constant 0 : index
    %42 = vector.load %arg4[%c1_35, %c0_36, %c0_37] : memref<2x16x32xf32, #tpu.memory_space<vmem>>, vector<1x16x32xf32>
    %43 = vector.shape_cast %42 : vector<1x16x32xf32> to vector<16x32xf32>
    %44 = vector.shape_cast %41 : vector<16x32xf32> to vector<1x16x32xf32>
    tpu.vector_store %arg4[%c1_35, %c0_36, %c0_37], %44 {strides = array<i32>} : memref<2x16x32xf32, #tpu.memory_space<vmem>>, vector<1x16x32xf32>,
    return
  }
  func.func @transform_0(%arg0: i32) -> (i32, i32, i32) {
    %c0_i32 = arith.constant 0 : i32
    %c0_i32_0 = arith.constant 0 : i32
    %c0_i32_1 = arith.constant 0 : i32
    return %arg0, %c0_i32, %c0_i32_0 : i32, i32, i32
  }
  func.func @transform_1(%arg0: i32) -> (i32, i32) {
    %c0_i32 = arith.constant 0 : i32
    %c0_i32_0 = arith.constant 0 : i32
    %c0_i32_1 = arith.constant 0 : i32
    return %c0_i32, %c0_i32_0 : i32, i32
  }
  func.func @transform_2(%arg0: i32) -> (i32, i32, i32) {
    %c0_i32 = arith.constant 0 : i32
    %c0_i32_0 = arith.constant 0 : i32
    %c0_i32_1 = arith.constant 0 : i32
    %c0_i32_2 = arith.constant 0 : i32
    return %c0_i32, %c0_i32_0, %c0_i32_1 : i32, i32, i32
  }
  func.func @transform_3(%arg0: i32) -> (i32, i32, i32) {
    %c0_i32 = arith.constant 0 : i32
    %c0_i32_0 = arith.constant 0 : i32
    %c0_i32_1 = arith.constant 0 : i32
    return %arg0, %c0_i32, %c0_i32_0 : i32, i32, i32
  }
}

</mosaic_0001>

<bundles_post_ra>
// kernel: tpu_custom_call.1
= control target key start
LH: loop header
LB: loop body
LE: loop exit
PB: predicated region body
PF: predicated region fallthrough
CT: control target
= control target key end

     0   :  { %vm29_vm0 = vcmask 523264   ;;  %s1169_s0 = inlined_call_operand.vmem [shape: f32[2,64,16], index: 0, kind: input, shape index: {}]   ;;  %s1170_s1 = inlined_call_operand.vmem [shape: f32[48,64], index: 1, kind: input, shape index: {}]   ;;  %s1171_s2 = inlined_call_operand.vmem [shape: f32[3,16,32], index: 2, kind: input, shape index: {}]   ;;  %s1172_s3 = inlined_call_operand.hbm [shape: f32[2,16,32], index: 3, kind: output, shape index: {}]  }
   0x1   :  { %v28_v0 = vld [vmem:[%s1169_s0 + $0x38] sm:$0xff]  ;;  %v27_v1 = vld [vmem:[%s1169_s0 + $0x30] sm:$0xff]  ;;  %v26_v2 = vld [vmem:[%s1169_s0 + $0x28] sm:$0xff] }
   0x2   :  { %866 = vmatprep.subr.mxu0 %v28_v0  ;;  %v1018_v3 = vld [vmem:[%s1170_s1] sm:$0xff] }
   0x3   :  { %867 = vmatpush3.msra.mxu0 %v28_v0  ;;  %882 = vmatprep.mubr.msk.f32.mxu0 %vm29_vm0, %v1018_v3  ;;  %v25_v4 = vld [vmem:[%s1169_s0 + $0x20] sm:$0xff] }
   0x4   :  { %868 = vmatprep.subr.mxu0 %v27_v1 }
   0x5   :  { %869 = vmatpush3.msra.mxu0 %v27_v1 }
   0x6   :  { %8 = vsyncpa [#allocation3], 0  ;;  %870 = vmatprep.subr.mxu0 %v26_v2  ;;  %v24_v5 = vld [vmem:[%s1169_s0 + $0x18] sm:$0xff]  ;;  %v23_v6 = vld [vmem:[%s1169_s0 + $0x10] sm:$0xff]  ;;  %vm148_vm1 = vcmask 130048   ;;  %vm397_vm2 = vcmask 261120  }
   0x7   :  { %871 = vmatpush3.msra.mxu0 %v26_v2  ;;  %v22_v7 = vld [vmem:[%s1169_s0 + $0x8] sm:$0xff]  ;;  %v21_v8 = vld [vmem:[%s1169_s0] sm:$0xff]  ;;  %v1045_v10 = vld [vmem:[%s1170_s1 + $0x10] sm:$0xff] }
   0x8   :  { %872 = vmatprep.subr.mxu0 %v25_v4  ;;  %v1040_v9 = vld [vmem:[%s1170_s1 + $0x8] sm:$0xff]  ;;  %v1054_v11 = vld [vmem:[%s1170_s1 + $0x18] sm:$0xff]  ;;  %v1059_v12 = vld [vmem:[%s1170_s1 + $0x20] sm:$0xff] }
   0x9   :  { %873 = vmatpush3.msra.mxu0 %v25_v4  ;;  %v1068_v13 = vld [vmem:[%s1170_s1 + $0x28] sm:$0xff]  ;;  %v781_v14 = vld [vmem:[%s1171_s2 + $0x18] sm:$0xff]  ;;  %v780_v15 = vld [vmem:[%s1171_s2 + $0x10] sm:$0xff] }
   0xa   :  { %874 = vmatprep.subr.mxu0 %v24_v5  ;;  %891 = vmatprep.subr.mxu1 %v781_v14  ;;  %v1081_v16 = vld [vmem:[%s1171_s2 + $0x8] sm:$0xff]  ;;  %v1089_v21 = vld [vmem:[%s1171_s2] sm:$0xff]  ;;  %v797_v26 = vld [vmem:[%s1169_s0 + $0x78] sm:$0xff] }
   0xb   :  { %875 = vmatpush3.msra.mxu0 %v24_v5  ;;  %892 = vmatpush3.msra.mxu1 %v781_v14  ;;  %v1097_v23 = vld [vmem:[%s1171_s2 + $0x28] sm:$0xff]  ;;  %v1104_v25 = vld [vmem:[%s1171_s2 + $0x20] sm:$0xff]  ;;  %v796_v27 = vld [vmem:[%s1169_s0 + $0x70] sm:$0xff] }
   0xc   :  { %876 = vmatprep.subr.mxu0 %v23_v6  ;;  %893 = vmatprep.subr.mxu1 %v780_v15  ;;  %v795_v28 = vld [vmem:[%s1169_s0 + $0x68] sm:$0xff]  ;;  %v794_v29 = vld [vmem:[%s1169_s0 + $0x60] sm:$0xff]  ;;  %v793_v30 = vld [vmem:[%s1169_s0 + $0x58] sm:$0xff] }
   0xd   :  { %877 = vmatpush3.msra.mxu0 %v23_v6  ;;  %894 = vmatpush3.msra.mxu1 %v780_v15  ;;  %v792_v31 = vld [vmem:[%s1169_s0 + $0x50] sm:$0xff]  ;;  %v791_v32 = vld [vmem:[%s1169_s0 + $0x48] sm:$0xff]  ;;  %v790_v33 = vld [vmem:[%s1169_s0 + $0x40] sm:$0xff]  ;;  %s983_s0 = smov [#allocation2]  }
   0xe   :  { %878 = vmatprep.subr.mxu0 %v22_v7  ;;  %898 = vmatprep.subr.mxu1 %v1081_v16  ;;  %s763_s12 = sshll.u32 %s983_s0, 4  ;;  %s764_s12 = int_to_ptr.vmem [resolvable:$true] %s763_s12 }
   0xf   :  { %879 = vmatpush3.msra.mxu0 %v22_v7  ;;  %s961_s13 = scalar_lea.vmem %s764_s12, 512  ;;  %p966_p1 = scmp.lt.s32.totalorder %s764_s12, %s764_s12 }
  0x10   :  { %880 = vmatprep.subr.mxu0 %v21_v8  ;;  %p962_p0 = scmp.ne.s32.totalorder %s764_s12, %s961_s13  ;;  %p967_p2 = scmp.lt.s32.totalorder %s961_s13, %s961_s13 }
  0x11   :  { %881 = vmatpush3.msra.mxu0 %v21_v8 }
  0x12   :  { %883 = vmatmul.mubr.msk.f32.vlgmr.msra.gmra.mxu0 %vm29_vm0, %v1040_v9  ;;  %937 = vmatprep.subr.mxu0 %v781_v14  ;;  %p968_p3 = por %p967_p2, %p966_p1 }
  0x13   :  { %885 = vmatprep.mubr.msk.f32.mxu0 %vm29_vm0, %v1045_v10  ;;  %938 = vmatpush3.msra.mxu0 %v781_v14 }
  0x14   :  { %939 = vmatprep.subr.mxu0 %v780_v15  ;;  %p969_p4 = pnand %p968_p3, %p962_p0 }
  0x15   :  { %940 = vmatpush3.msra.mxu0 %v780_v15 }
  0x16   :  { %886 = vmatmul.mubr.msk.f32.gmra.mxu0 %vm29_vm0, %v1054_v11  ;;  %944 = vmatprep.subr.mxu0 %v1081_v16 }
  0x17   :  { %888 = vmatprep.mubr.msk.f32.mxu0 %vm29_vm0, %v1059_v12 }
  0x1a   :  { %889 = vmatmul.mubr.msk.f32.gmra.mxu0 %vm29_vm0, %v1068_v13 }
  0xd2   :  { %v884_v17 = vpop.f32.mrf.mxu0 }
  0xd4   :  { %v114_v18 = vpop.f32.mrf.mxu0 }
  0xd6   :  { %v887_v19 = vpop.f32.mrf.mxu0 }
  0xd8   :  { %v124_v20 = vpop.f32.mrf.mxu0 }
  0xd9   :  { %895 = vmatprep.mubr.msk.f32.mxu1 %vm148_vm1, %v124_v20 }
  0xda   :  { %896 = vmatmul.mubr.msk.f32.vlgmr.msra.gmra.mxu1 %vm148_vm1, %v887_v19  ;;  %v890_v22 = vpop.f32.mrf.mxu0 }
  0xdb   :  { %899 = vmatpush3.msra.mxu1 %v1081_v16  ;;  %902 = vmatprep.mubr.msk.f32.mxu1 %vm148_vm1, %v114_v18 }
  0xdc   :  { %900 = vmatprep.subr.mxu1 %v1089_v21  ;;  %v134_v24 = vpop.f32.mrf.mxu0 }
  0xdd   :  { %901 = vmatpush3.msra.mxu1 %v1089_v21 }
  0xde   :  { %905 = vmatprep.subr.mxu1 %v1097_v23  ;;  %903 = vmatmul.mubr.msk.f32.vlgmr.msra.gmra.mxu1 %vm148_vm1, %v884_v17 }
  0xdf   :  { %906 = vmatpush3.msra.mxu1 %v1097_v23  ;;  %909 = vmatprep.mubr.msk.f32.mxu1 %vm148_vm1, %v134_v24 }
  0xe0   :  { %907 = vmatprep.subr.mxu1 %v1104_v25 }
  0xe1   :  { %908 = vmatpush3.msra.mxu1 %v1104_v25 }
  0xe2   :  { %912 = vmatprep.subr.mxu1 %v797_v26  ;;  %910 = vmatmul.mubr.msk.f32.vlgmr.msra.gmra.mxu1 %vm148_vm1, %v890_v22 }
  0xe3   :  { %913 = vmatpush3.msra.mxu1 %v797_v26  ;;  %928 = vmatprep.mubr.msk.f32.mxu1 %vm29_vm0, %v1018_v3 }
  0xe4   :  { %914 = vmatprep.subr.mxu1 %v796_v27 }
  0xe5   :  { %915 = vmatpush3.msra.mxu1 %v796_v27 }
  0xe6   :  { %916 = vmatprep.subr.mxu1 %v795_v28 }
  0xe7   :  { %917 = vmatpush3.msra.mxu1 %v795_v28 }
  0xe8   :  { %918 = vmatprep.subr.mxu1 %v794_v29 }
  0xe9   :  { %919 = vmatpush3.msra.mxu1 %v794_v29 }
  0xea   :  { %920 = vmatprep.subr.mxu1 %v793_v30 }
  0xeb   :  { %921 = vmatpush3.msra.mxu1 %v793_v30 }
  0xec   :  { %922 = vmatprep.subr.mxu1 %v792_v31 }
  0xed   :  { %923 = vmatpush3.msra.mxu1 %v792_v31 }
  0xee   :  { %924 = vmatprep.subr.mxu1 %v791_v32 }
  0xef   :  { %925 = vmatpush3.msra.mxu1 %v791_v32 }
  0xf0   :  { %926 = vmatprep.subr.mxu1 %v790_v33 }
  0xf1   :  { %927 = vmatpush3.msra.mxu1 %v790_v33 }
  0xf2   :  { %929 = vmatmul.mubr.msk.f32.vlgmr.msra.gmra.mxu1 %vm29_vm0, %v1040_v9 }
  0xf3   :  { %931 = vmatprep.mubr.msk.f32.mxu1 %vm29_vm0, %v1045_v10 }
  0xf6   :  { %932 = vmatmul.mubr.msk.f32.gmra.mxu1 %vm29_vm0, %v1054_v11 }
  0xf7   :  { %934 = vmatprep.mubr.msk.f32.mxu1 %vm29_vm0, %v1059_v12 }
  0xfa   :  { %935 = vmatmul.mubr.msk.f32.gmra.mxu1 %vm29_vm0, %v1068_v13 }
 0x19a   :  { %v897_v34 = vpop.f32.mrf.mxu1 }
 0x19c   :  { %v221_v35 = vpop.f32.mrf.mxu1 }
 0x19e   :  { %v904_v36 = vpop.f32.mrf.mxu1 }
 0x19f   :  { %v308_v38 = vadd.f32 %v904_v36, %v897_v34 }
 0x1a0   :  { %v302_v37 = vpop.f32.mrf.mxu1 }
 0x1a1   :  { %v303_v40 = vadd.f32 %v302_v37, %v221_v35 }
 0x1a2   :  { %v911_v39 = vpop.f32.mrf.mxu1 }
 0x1a3   :  { %v396_v41 = vadd.f32 %v911_v39, %v308_v38 }
 0x1a4   :  { %v386_v42 = vpop.f32.mrf.mxu1 }
 0x1a5   :  { %399 = vst.msk [vmem:[#allocation2 + $0x8] sm:$0xff] %vm397_vm2, %v396_v41  ;;  %v395_v43 = vadd.f32 %v386_v42, %v303_v40 }
 0x1a7   :  { %398 = vst.msk [vmem:[#allocation2] sm:$0xff] %vm397_vm2, %v395_v43 }
 0x1b2   :  { %v930_v44 = vpop.f32.mrf.mxu1 }
 0x1b4   :  { %v475_v45 = vpop.f32.mrf.mxu1 }
 0x1b6   :  { %v933_v46 = vpop.f32.mrf.mxu1 }
 0x1b8   :  { %v485_v47 = vpop.f32.mrf.mxu1 }
 0x1b9   :  { %941 = vmatprep.mubr.msk.f32.mxu0 %vm148_vm1, %v485_v47 }
 0x1ba   :  { %942 = vmatmul.mubr.msk.f32.vlgmr.msra.gmra.mxu0 %vm148_vm1, %v933_v46  ;;  %v936_v48 = vpop.f32.mrf.mxu1 }
 0x1bb   :  { %945 = vmatpush3.msra.mxu0 %v1081_v16  ;;  %948 = vmatprep.mubr.msk.f32.mxu0 %vm148_vm1, %v475_v45 }
 0x1bc   :  { %946 = vmatprep.subr.mxu0 %v1089_v21  ;;  %v495_v49 = vpop.f32.mrf.mxu1 }
 0x1bd   :  { %947 = vmatpush3.msra.mxu0 %v1089_v21 }
 0x1be   :  { %951 = vmatprep.subr.mxu0 %v1097_v23  ;;  %949 = vmatmul.mubr.msk.f32.vlgmr.msra.gmra.mxu0 %vm148_vm1, %v930_v44 }
 0x1bf   :  { %952 = vmatpush3.msra.mxu0 %v1097_v23  ;;  %955 = vmatprep.mubr.msk.f32.mxu0 %vm148_vm1, %v495_v49 }
 0x1c0   :  { %953 = vmatprep.subr.mxu0 %v1104_v25 }
 0x1c1   :  { %954 = vmatpush3.msra.mxu0 %v1104_v25 }
 0x1c2   :  { %956 = vmatmul.mubr.msk.f32.vlgmr.msra.gmra.mxu0 %vm148_vm1, %v936_v48 }
 0x27a   :  { %v943_v50 = vpop.f32.mrf.mxu0 }
 0x27c   :  { %v580_v51 = vpop.f32.mrf.mxu0 }
 0x27e   :  { %v950_v52 = vpop.f32.mrf.mxu0 }
 0x27f   :  { %v667_v54 = vadd.f32 %v950_v52, %v943_v50 }
 0x280   :  { %v661_v53 = vpop.f32.mrf.mxu0 }
 0x281   :  { %v662_v56 = vadd.f32 %v661_v53, %v580_v51 }
 0x282   :  { %v957_v55 = vpop.f32.mrf.mxu0 }
 0x283   :  { %v754_v57 = vadd.f32 %v957_v55, %v667_v54 }
 0x284   :  { %v744_v58 = vpop.f32.mrf.mxu0 }
 0x285   :  { %757 = vst.msk [vmem:[#allocation2 + $0x18] sm:$0xff] %vm397_vm2, %v754_v57  ;;  %v753_v59 = vadd.f32 %v744_v58, %v662_v56 }
 0x287   :  { %756 = vst.msk [vmem:[#allocation2 + $0x10] sm:$0xff] %vm397_vm2, %v753_v59 }
 0x288   :  { %972 = shalt.err (!%p969_p4)
}
 0x289   :  { %s984_s14 = smov 128   ;;  %s985_s15 = smov 8  }
 0x28a   :  { %769 = dma.vmem_to_hbm [thread:$0]  %s764_s12, 512, %s1172_s3, [#allocation3], %s984_s14, %s984_s14, %s985_s15  }
 0x28b   :  { %981 = dma.done.wait [#allocation3], 512  }
 0x28c   :  { %982 = vsyncadd [#allocation3], 4294966784 }
 0x28d   :  { %773 = vsyncpa [#allocation3], 1 }

</bundles_post_ra>
